<compile_context>
chip_gen: v6e
topology: v6e:2x2x1
jax: 0.10.0
libtpu: 0.0.40
codegen_flags: <defaults>
</compile_context>

<pallas_src>
import functools

import jax
import jax.numpy as jnp
from jax.experimental import pallas as pl
from jax.experimental.pallas import tpu as pltpu


def _subword_kernel(x_ref, wconv_ref, bconv_ref, emb_ref,
                    wlin_h_ref, wlin_e_ref, blin_ref, out_ref):
    # x_ref     : (B, L, C_in)   bf16  channels-last character embeddings (whole batch)
    # wconv_ref : (K, C_in, CHp) bf16  Conv1d weight, output channels zero-padded to 128
    # bconv_ref : (1, CHp)       f32   Conv1d bias (zero in padded channels)
    # emb_ref   : (B, E)         bf16  pre-gathered word embeddings
    # wlin_h_ref: (CHp, NLp)     bf16  Linear weight, conv-feature half (zero padded)
    # wlin_e_ref: (E, NLp)       bf16  Linear weight, word-embedding half (zero padded)
    # blin_ref  : (1, NLp)       f32   Linear bias (-1e30 in padded label columns)
    # out_ref   : (B, NLp)       f32   softmax probabilities (lane-dense, sliced outside)
    B, L, _ = x_ref.shape
    K, _, CHp = wconv_ref.shape
    L_out = L - K + 1

    # Conv1d as K shifted, batched matmuls accumulated in f32 (no im2col).
    x = x_ref[...]                                              # (B, L, C_in) bf16
    acc = jnp.zeros((B, L_out, CHp), jnp.float32)
    for k in range(K):                                          # static Python loop (K small)
        xk = x[:, k:k + L_out, :]                               # (B, L_out, C_in)
        wk = jnp.broadcast_to(wconv_ref[k][None],
                              (B,) + wconv_ref.shape[1:])       # (B, C_in, CHp)
        acc = acc + jnp.einsum('blc,bch->blh', xk, wk,
                               preferred_element_type=jnp.float32)

    # max over the sequence dim, then bias (t-invariant, so max commutes) + relu, in f32.
    h = jnp.max(acc, axis=1)                                    # (B, CHp)
    h = jnp.maximum(h + bconv_ref[...], 0.0)

    # cat([h, word_emb]) @ W.T + b folded into two matmuls on the split weight.
    logits = (jnp.dot(h.astype(jnp.bfloat16), wlin_h_ref[...],
                      preferred_element_type=jnp.float32)
              + jnp.dot(emb_ref[...], wlin_e_ref[...],
                        preferred_element_type=jnp.float32)
              + blin_ref[...])                                  # (B, NLp)

    # softmax over labels; padded columns carry -1e30 bias -> exp underflows to 0.
    m = jnp.max(logits, axis=-1, keepdims=True)
    e = jnp.exp(logits - m)
    denom = jnp.sum(e, axis=-1, keepdims=True)
    out_ref[...] = e * pl.reciprocal(denom, approx=True)


def _round_up(x, m):
    return ((x + m - 1) // m) * m


@functools.partial(jax.jit, static_argnames=("window_size",))
def conv_base_subword_forward(embedded_words, word_ids, params, *, window_size):
    """embedded_words: (B, C_in, L) float32 (NCL, as PyTorch Conv1d expects).
       word_ids:       (B,) int32 indices into the word-embedding table."""
    wconv, bconv, wlin, blin, emb_table = params
    B, C_in, L = embedded_words.shape
    CH = wconv.shape[0]
    K = window_size
    NL = wlin.shape[0]
    CHp = _round_up(CH, 128)          # lane-dense conv channels
    NLp = _round_up(NL, 128)          # lane-dense logits / output

    # --- glue (plain JAX): layout, lane padding, embedding gather -------------------
    x_blc = jnp.transpose(embedded_words, (0, 2, 1)).astype(jnp.bfloat16)   # (B, L, C_in)
    wk = jnp.transpose(wconv, (2, 1, 0)).astype(jnp.bfloat16)               # (K, C_in, CH)
    wk = jnp.pad(wk, ((0, 0), (0, 0), (0, CHp - CH)))                       # (K, C_in, CHp)
    bconv_p = jnp.pad(bconv.astype(jnp.float32), (0, CHp - CH)).reshape(1, CHp)
    word_emb = emb_table[word_ids].astype(jnp.bfloat16)                     # (B, E)
    wlin_t = wlin.astype(jnp.float32).T                                     # (CH+E, NL)
    wlh = jnp.pad(wlin_t[:CH], ((0, CHp - CH), (0, NLp - NL))).astype(jnp.bfloat16)
    wle = jnp.pad(wlin_t[CH:], ((0, 0), (0, NLp - NL))).astype(jnp.bfloat16)
    blin_p = jnp.pad(blin.astype(jnp.float32), (0, NLp - NL),
                     constant_values=-1e30).reshape(1, NLp)

    out = pl.pallas_call(
        _subword_kernel,
        out_shape=jax.ShapeDtypeStruct((B, NLp), jnp.float32),
        # Single invocation (no grid): every operand is one full-array VMEM block.
        in_specs=[pl.BlockSpec(memory_space=pltpu.MemorySpace.VMEM)] * 7,
        out_specs=pl.BlockSpec(memory_space=pltpu.MemorySpace.VMEM),
    )(x_blc, wk, bconv_p, word_emb, wlh, wle, blin_p)
    return out[:, :NL]


def reference_forward(embedded_words, word_ids, params, *, window_size):
    """Pure-f32 JAX reference mirroring the PyTorch forward (independent of the kernel)."""
    wconv, bconv, wlin, blin, emb_table = params
    x = jax.lax.conv_general_dilated(
        embedded_words.astype(jnp.float32), wconv.astype(jnp.float32),
        window_strides=(1,), padding="VALID",
        dimension_numbers=("NCH", "OIH", "NCH"))                 # (B, CH, L_out)
    x = x + bconv[None, :, None]
    x = jnp.max(x, axis=2)
    x = jax.nn.relu(x)
    existing = emb_table[word_ids].astype(jnp.float32)
    x = jnp.concatenate([x, existing], axis=-1)
    x = x @ wlin.T + blin
    return jax.nn.softmax(x, axis=1)


def mirror_reference(embedded_words, word_ids, params, *, window_size):
    """Plain-JAX mirror of the kernel's bf16/f32 numerics (tight correctness check)."""
    wconv, bconv, wlin, blin, emb_table = params
    B, C_in, L = embedded_words.shape
    CH = wconv.shape[0]
    K = window_size
    L_out = L - K + 1
    x = jnp.transpose(embedded_words, (0, 2, 1)).astype(jnp.bfloat16)
    wkk = jnp.transpose(wconv, (2, 1, 0)).astype(jnp.bfloat16)
    acc = jnp.zeros((B, L_out, CH), jnp.float32)
    for k in range(K):
        acc = acc + jnp.einsum('blc,ch->blh', x[:, k:k + L_out, :], wkk[k],
                               preferred_element_type=jnp.float32)
    h = jnp.maximum(jnp.max(acc, axis=1) + bconv, 0.0)
    emb = emb_table[word_ids].astype(jnp.bfloat16)
    wlin_t = wlin.astype(jnp.float32).T
    logits = (jnp.dot(h.astype(jnp.bfloat16), wlin_t[:CH].astype(jnp.bfloat16),
                      preferred_element_type=jnp.float32)
              + jnp.dot(emb, wlin_t[CH:].astype(jnp.bfloat16),
                        preferred_element_type=jnp.float32)
              + blin)
    return jax.nn.softmax(logits, axis=1)


if __name__ == "__main__":
    # Small, deterministic configuration consistent with the module's __init__.
    B = 8              # number of words (batch)
    C_IN = 16          # character_embedding_size
    L = 12             # characters per word (sequence length)
    K = 3              # window_size
    CH = 32            # channel
    E = 32             # pretrained word-embedding dim (= len(embeddings[UNK]))
    NL = 8             # num_of_labels
    VOCAB = 20

    key = jax.random.PRNGKey(0)
    k1, k2, k3, k4, k5, k6, k7 = jax.random.split(key, 7)

    # Deterministic synthetic parameters (shapes follow torch Conv1d / Linear).
    wconv = 0.1 * jax.random.normal(k1, (CH, C_IN, K), jnp.float32)   # Conv1d.weight
    bconv = 0.1 * jax.random.normal(k2, (CH,), jnp.float32)           # Conv1d.bias
    wlin = 0.1 * jax.random.normal(k3, (NL, CH + E), jnp.float32)     # Linear.weight
    blin = 0.1 * jax.random.normal(k4, (NL,), jnp.float32)            # Linear.bias
    emb_table = jax.random.normal(k5, (VOCAB, E), jnp.float32)        # pretrained embeddings
    params = (wconv, bconv, wlin, blin, emb_table)

    embedded_words = jax.random.normal(k6, (B, C_IN, L), jnp.float32)  # NCL
    word_ids = jax.random.randint(k7, (B,), 0, VOCAB, jnp.int32)
    # TODO(synk): string-keyed dict lookup `embeddings[word[0]]` has no in-kernel
    # equivalent; it is modeled as an integer-id table gather in plain JAX.

    out = conv_base_subword_forward(embedded_words, word_ids, params, window_size=K)
    out = jax.block_until_ready(out)

    ref_f32 = reference_forward(embedded_words, word_ids, params, window_size=K)
    ref_bf16 = mirror_reference(embedded_words, word_ids, params, window_size=K)

    assert out.shape == (B, NL)
    assert jnp.allclose(jnp.sum(out, axis=1), 1.0, atol=1e-2), (
        f"row sums off: {jnp.sum(out, axis=1)}")
    # Tight check vs. a plain-JAX mirror of the kernel's bf16/f32 numerics.
    assert jnp.allclose(out, ref_bf16, atol=5e-3, rtol=5e-3), (
        f"max abs err vs bf16 mirror {jnp.max(jnp.abs(out - ref_bf16))}")
    # Loose check vs. the full-f32 PyTorch-equivalent forward (bf16 MXU operands).
    assert jnp.allclose(out, ref_f32, atol=3e-2, rtol=3e-2), (
        f"max abs err vs f32 reference {jnp.max(jnp.abs(out - ref_f32))}")
    print("KERNEL_OK")
</pallas_src>

<mosaic_0001>
module attributes {stable_mosaic.version = 11 : i64} {
  func.func @_subword_kernel(%arg0: memref<8x12x16xbf16, #tpu.memory_space<vmem>>, %arg1: memref<3x16x128xbf16, #tpu.memory_space<vmem>>, %arg2: memref<1x128xf32, #tpu.memory_space<vmem>>, %arg3: memref<8x32xbf16, #tpu.memory_space<vmem>>, %arg4: memref<128x128xbf16, #tpu.memory_space<vmem>>, %arg5: memref<32x128xbf16, #tpu.memory_space<vmem>>, %arg6: memref<1x128xf32, #tpu.memory_space<vmem>>, %arg7: memref<8x128xf32, #tpu.memory_space<vmem>>) attributes {dimension_semantics = [], scalar_prefetch = 0 : i64, scratch_operands = 0 : i64, tpu.core_type = #tpu.core_type<tc>} {
    %c0 = arith.constant 0 : index
    %c0_0 = arith.constant 0 : index
    %c0_1 = arith.constant 0 : index
    %0 = vector.load %arg0[%c0, %c0_0, %c0_1] : memref<8x12x16xbf16, #tpu.memory_space<vmem>>, vector<8x12x16xbf16>
    %cst = arith.constant 0.000000e+00 : f32
    %1 = vector.broadcast %cst : f32 to vector<8x10x128xf32>
    %2 = vector.extract_strided_slice %0 {offsets = [0, 0, 0], sizes = [8, 10, 16], strides = [1, 1, 1]} : vector<8x12x16xbf16> to vector<8x10x16xbf16>
    %c0_2 = arith.constant 0 : index
    %c0_3 = arith.constant 0 : index
    %c0_4 = arith.constant 0 : index
    %3 = vector.load %arg1[%c0_2, %c0_3, %c0_4] : memref<3x16x128xbf16, #tpu.memory_space<vmem>>, vector<1x16x128xbf16>
    %4 = vector.shape_cast %3 : vector<1x16x128xbf16> to vector<16x128xbf16>
    %5 = vector.shape_cast %4 : vector<16x128xbf16> to vector<1x16x128xbf16>
    %6 = vector.shape_cast %5 : vector<1x16x128xbf16> to vector<1x16x128xbf16>
    %7 = vector.broadcast %6 : vector<1x16x128xbf16> to vector<8x16x128xbf16>
    "tpu.trace_start"() <{level = 10 : i32, message = "blc,bch->blh"}> : () -> ()
    %cst_5 = arith.constant dense<0.000000e+00> : vector<8x10x128xf32>
    %8 = tpu.matmul %2, %7, %cst_5 {dimension_numbers = #tpu.dot_dimension_numbers<[2], [1], [1], [2], [0, 0, 0, 1, 1, 2], [0], [0]>} : vector<8x10x16xbf16>, vector<8x16x128xbf16>, vector<8x10x128xf32> -> vector<8x10x128xf32>
    "tpu.trace_stop"() : () -> ()
    %9 = arith.addf %1, %8 : vector<8x10x128xf32>
    %10 = vector.extract_strided_slice %0 {offsets = [0, 1, 0], sizes = [8, 10, 16], strides = [1, 1, 1]} : vector<8x12x16xbf16> to vector<8x10x16xbf16>
    %c1 = arith.constant 1 : index
    %c0_6 = arith.constant 0 : index
    %c0_7 = arith.constant 0 : index
    %11 = vector.load %arg1[%c1, %c0_6, %c0_7] : memref<3x16x128xbf16, #tpu.memory_space<vmem>>, vector<1x16x128xbf16>
    %12 = vector.shape_cast %11 : vector<1x16x128xbf16> to vector<16x128xbf16>
    %13 = vector.shape_cast %12 : vector<16x128xbf16> to vector<1x16x128xbf16>
    %14 = vector.shape_cast %13 : vector<1x16x128xbf16> to vector<1x16x128xbf16>
    %15 = vector.broadcast %14 : vector<1x16x128xbf16> to vector<8x16x128xbf16>
    "tpu.trace_start"() <{level = 10 : i32, message = "blc,bch->blh"}> : () -> ()
    %cst_8 = arith.constant dense<0.000000e+00> : vector<8x10x128xf32>
    %16 = tpu.matmul %10, %15, %cst_8 {dimension_numbers = #tpu.dot_dimension_numbers<[2], [1], [1], [2], [0, 0, 0, 1, 1, 2], [0], [0]>} : vector<8x10x16xbf16>, vector<8x16x128xbf16>, vector<8x10x128xf32> -> vector<8x10x128xf32>
    "tpu.trace_stop"() : () -> ()
    %17 = arith.addf %9, %16 : vector<8x10x128xf32>
    %18 = vector.extract_strided_slice %0 {offsets = [0, 2, 0], sizes = [8, 10, 16], strides = [1, 1, 1]} : vector<8x12x16xbf16> to vector<8x10x16xbf16>
    %c2 = arith.constant 2 : index
    %c0_9 = arith.constant 0 : index
    %c0_10 = arith.constant 0 : index
    %19 = vector.load %arg1[%c2, %c0_9, %c0_10] : memref<3x16x128xbf16, #tpu.memory_space<vmem>>, vector<1x16x128xbf16>
    %20 = vector.shape_cast %19 : vector<1x16x128xbf16> to vector<16x128xbf16>
    %21 = vector.shape_cast %20 : vector<16x128xbf16> to vector<1x16x128xbf16>
    %22 = vector.shape_cast %21 : vector<1x16x128xbf16> to vector<1x16x128xbf16>
    %23 = vector.broadcast %22 : vector<1x16x128xbf16> to vector<8x16x128xbf16>
    "tpu.trace_start"() <{level = 10 : i32, message = "blc,bch->blh"}> : () -> ()
    %cst_11 = arith.constant dense<0.000000e+00> : vector<8x10x128xf32>
    %24 = tpu.matmul %18, %23, %cst_11 {dimension_numbers = #tpu.dot_dimension_numbers<[2], [1], [1], [2], [0, 0, 0, 1, 1, 2], [0], [0]>} : vector<8x10x16xbf16>, vector<8x16x128xbf16>, vector<8x10x128xf32> -> vector<8x10x128xf32>
    "tpu.trace_stop"() : () -> ()
    %25 = arith.addf %17, %24 : vector<8x10x128xf32>
    %cst_12 = arith.constant dense<0xFF800000> : vector<8x128xf32>
    %26 = vector.multi_reduction <maximumf>, %25, %cst_12 [1] : vector<8x10x128xf32> to vector<8x128xf32>
    %c0_13 = arith.constant 0 : index
    %c0_14 = arith.constant 0 : index
    %27 = vector.load %arg2[%c0_13, %c0_14] : memref<1x128xf32, #tpu.memory_space<vmem>>, vector<1x128xf32>
    %28 = vector.broadcast %27 : vector<1x128xf32> to vector<8x128xf32>
    %29 = arith.addf %26, %28 : vector<8x128xf32>
    %cst_15 = arith.constant 0.000000e+00 : f32
    %30 = vector.broadcast %cst_15 : f32 to vector<8x128xf32>
    %31 = arith.maximumf %29, %30 : vector<8x128xf32>
    %32 = arith.truncf %31 : vector<8x128xf32> to vector<8x128xbf16>
    %c0_16 = arith.constant 0 : index
    %c0_17 = arith.constant 0 : index
    %33 = vector.load %arg4[%c0_16, %c0_17] : memref<128x128xbf16, #tpu.memory_space<vmem>>, vector<128x128xbf16>
    %cst_18 = arith.constant dense<0.000000e+00> : vector<8x128xf32>
    %34 = tpu.matmul %32, %33, %cst_18 {dimension_numbers = #tpu.dot_dimension_numbers<[1], [0], [0], [1], [0, 0, 1, 1], [], []>} : vector<8x128xbf16>, vector<128x128xbf16>, vector<8x128xf32> -> vector<8x128xf32>
    %c0_19 = arith.constant 0 : index
    %c0_20 = arith.constant 0 : index
    %35 = vector.load %arg3[%c0_19, %c0_20] : memref<8x32xbf16, #tpu.memory_space<vmem>>, vector<8x32xbf16>
    %c0_21 = arith.constant 0 : index
    %c0_22 = arith.constant 0 : index
    %36 = vector.load %arg5[%c0_21, %c0_22] : memref<32x128xbf16, #tpu.memory_space<vmem>>, vector<32x128xbf16>
    %cst_23 = arith.constant dense<0.000000e+00> : vector<8x128xf32>
    %37 = tpu.matmul %35, %36, %cst_23 {dimension_numbers = #tpu.dot_dimension_numbers<[1], [0], [0], [1], [0, 0, 1, 1], [], []>} : vector<8x32xbf16>, vector<32x128xbf16>, vector<8x128xf32> -> vector<8x128xf32>
    %38 = arith.addf %34, %37 : vector<8x128xf32>
    %c0_24 = arith.constant 0 : index
    %c0_25 = arith.constant 0 : index
    %39 = vector.load %arg6[%c0_24, %c0_25] : memref<1x128xf32, #tpu.memory_space<vmem>>, vector<1x128xf32>
    %40 = vector.broadcast %39 : vector<1x128xf32> to vector<8x128xf32>
    %41 = arith.addf %38, %40 : vector<8x128xf32>
    %cst_26 = arith.constant dense<0xFF800000> : vector<8xf32>
    %42 = vector.multi_reduction <maximumf>, %41, %cst_26 [1] : vector<8x128xf32> to vector<8xf32>
    %43 = vector.shape_cast %42 : vector<8xf32> to vector<8x1xf32>
    %44 = vector.broadcast %43 : vector<8x1xf32> to vector<8x128xf32>
    %45 = arith.subf %41, %44 : vector<8x128xf32>
    %46 = math.exp %45 : vector<8x128xf32>
    %cst_27 = arith.constant dense<0.000000e+00> : vector<8xf32>
    %47 = vector.multi_reduction <add>, %46, %cst_27 [1] : vector<8x128xf32> to vector<8xf32>
    %48 = vector.shape_cast %47 : vector<8xf32> to vector<8x1xf32>
    %49 = tpu.reciprocal %48 {approx = true} : vector<8x1xf32> -> vector<8x1xf32>
    %50 = vector.broadcast %49 : vector<8x1xf32> to vector<8x128xf32>
    %51 = arith.mulf %46, %50 : vector<8x128xf32>
    %c0_28 = arith.constant 0 : index
    %c0_29 = arith.constant 0 : index
    %52 = vector.load %arg7[%c0_28, %c0_29] : memref<8x128xf32, #tpu.memory_space<vmem>>, vector<8x128xf32>
    tpu.vector_store %arg7[%c0_28, %c0_29], %51 {strides = array<i32>} : memref<8x128xf32, #tpu.memory_space<vmem>>, vector<8x128xf32>,
    return
  }
}

</mosaic_0001>

<bundles_post_ra>
// kernel: conv_base_subword_forward.1
= control target key start
LH: loop header
LB: loop body
LE: loop exit
PB: predicated region body
PF: predicated region fallthrough
CT: control target
= control target key end

     0   :  { %v1905_v1 = vmov 0.0   ;;  %vm1906_vm0 = vmmov 0   ;;  %vm67_vm1 = vcmask 130048   ;;  %s2276_s0 = inlined_call_operand.vmem [shape: bf16[8,12,16], index: 0, kind: input, shape index: {}]   ;;  %s2277_s1 = inlined_call_operand.vmem [shape: bf16[3,16,128], index: 1, kind: input, shape index: {}]   ;;  %s2278_s2 = inlined_call_operand.vmem [shape: f32[1,128], index: 2, kind: input, shape index: {}]   ;;  %s2279_s3 = inlined_call_operand.vmem [shape: bf16[8,32], index: 3, kind: input, shape index: {}]   ;;  %s2280_s4 = inlined_call_operand.vmem [shape: bf16[128,128], index: 4, kind: input, shape index: {}]   ;;  %s2281_s5 = inlined_call_operand.vmem [shape: bf16[32,128], index: 5, kind: input, shape index: {}]   ;;  %s2282_s6 = inlined_call_operand.vmem [shape: f32[1,128], index: 6, kind: input, shape index: {}]   ;;  %s2283_s7 = inlined_call_operand.hbm [shape: f32[8,128], index: 7, kind: output, shape index: {}]  }
   0x1   :  { %v1951_v0 = vld [vmem:[%s2277_s1 + $0x8] sm:$0xff]   ;;  %1683 = vmatprep.subr.bf16.mxu0 %v1905_v1  ;;  %1701 = vmatprep.subr.bf16.mxu1 %v1905_v1  ;;  %v1960_v2 = vld [vmem:[%s2276_s0] sm:$0x3f]   ;;  %v1968_v3 = vld [vmem:[%s2276_s0 + $0x18] sm:$0x3f]  }
   0x2   :  { %1684 = vmatpush3.bf16.msra.mxu0 %v1951_v0  ;;  %1702 = vmatpush3.bf16.msra.mxu1 %v1951_v0  ;;  %v55_v4 = vshrl.u32 %v1960_v2, 16  ;;  %v57_v5 = vshll.u32 %v1960_v2, 16  ;;  %v1978_v6 = vld [vmem:[%s2276_s0 + $0x8] sm:$0x3f]   ;;  %v230_v7 = vshrl.u32 %v1968_v3, 16  ;;  %v232_v8 = vshll.u32 %v1968_v3, 16 }
   0x3   :  { %1685 = vmatprep.mubr.msk.bf16.mxu0 %vm1906_vm0, %v1905_v1  ;;  %1689 = vmatprep.subr.bf16.mxu0 %v1905_v1  ;;  %v1985_v9 = vld [vmem:[%s2276_s0 + $0x28] sm:$0x3f]   ;;  %v120_v11 = vshll.u32 %v1978_v6, 16  ;;  %v1992_v15 = vld [vmem:[%s2276_s0 + $0x10] sm:$0x3f]   ;;  %v118_v18 = vshrl.u32 %v1978_v6, 16 }
   0x4   :  { %1703 = vmatprep.mubr.msk.bf16.mxu1 %vm1906_vm0, %v1905_v1  ;;  %1713 = vmatprep.subr.bf16.mxu1 %v1905_v1  ;;  %v59_v10 = vrot.slane %v57_v5, 1  ;;  %v234_v12 = vrot.slane %v232_v8, 1  ;;  %v344_v13 = vshll.u32 %v1985_v9, 16  ;;  %v1997_v17 = vld [vmem:[%s2276_s0 + $0x38] sm:$0x3f]   ;;  %v342_v20 = vshrl.u32 %v1985_v9, 16 }
   0x5   :  { %v122_v19 = vrot.slane %v120_v11, 1  ;;  %v176_v22 = vshll.u32 %v1992_v15, 16  ;;  %v456_v23 = vshll.u32 %v1997_v17, 16  ;;  %v2015_v24 = vld [vmem:[%s2276_s0 + $0x20] sm:$0x3f]   ;;  %v174_v27 = vshrl.u32 %v1992_v15, 16 }
   0x6   :  { %v60_v14 = vor.u32 %v59_v10, %v55_v4  ;;  %v235_v16 = vor.u32 %v234_v12, %v230_v7  ;;  %v346_v21 = vrot.slane %v344_v13, 1  ;;  %v454_v29 = vshrl.u32 %v1997_v17, 16 }
   0x7   :  { %v123_v25 = vor.u32 %v122_v19, %v118_v18  ;;  %v178_v28 = vrot.slane %v176_v22, 1  ;;  %v458_v30 = vrot.slane %v456_v23, 1  ;;  %v288_v31 = vshll.u32 %v2015_v24, 16 }
   0x8   :  { %1686 = vmatmul.mubr.msk.bf16.vlgmr.msra.gmra.mxu0 %vm67_vm1, %v60_v14  ;;  %1704 = vmatmul.mubr.msk.bf16.vlgmr.msra.gmra.mxu1 %vm67_vm1, %v235_v16  ;;  %v347_v26 = vor.u32 %v346_v21, %v342_v20 }
   0x9   :  { %1690 = vmatpush3.bf16.msra.mxu0 %v1951_v0  ;;  %1714 = vmatpush3.bf16.msra.mxu1 %v1951_v0  ;;  %v179_v32 = vor.u32 %v178_v28, %v174_v27  ;;  %v459_v33 = vor.u32 %v458_v30, %v454_v29 }
   0xa   :  { %1691 = vmatprep.mubr.msk.bf16.mxu0 %vm1906_vm0, %v1905_v1  ;;  %1695 = vmatprep.subr.bf16.mxu0 %v1905_v1 }
   0xb   :  { %1715 = vmatprep.mubr.msk.bf16.mxu1 %vm1906_vm0, %v1905_v1  ;;  %1725 = vmatprep.subr.bf16.mxu1 %v1905_v1 }
  0x10   :  { %1692 = vmatmul.mubr.msk.bf16.vlgmr.msra.gmra.mxu0 %vm67_vm1, %v123_v25  ;;  %1716 = vmatmul.mubr.msk.bf16.vlgmr.msra.gmra.mxu1 %vm67_vm1, %v347_v26 }
  0x11   :  { %1696 = vmatpush3.bf16.msra.mxu0 %v1951_v0  ;;  %1726 = vmatpush3.bf16.msra.mxu1 %v1951_v0 }
  0x12   :  { %1697 = vmatprep.mubr.msk.bf16.mxu0 %vm1906_vm0, %v1905_v1  ;;  %1707 = vmatprep.subr.bf16.mxu0 %v1905_v1 }
  0x13   :  { %1727 = vmatprep.mubr.msk.bf16.mxu1 %vm1906_vm0, %v1905_v1  ;;  %1737 = vmatprep.subr.bf16.mxu1 %v1905_v1 }
  0x14   :  { %12 = vsyncpa [#allocation3], 0  ;;  %v1865_v34 = vld [vmem:[%s2277_s1] sm:$0xff]   ;;  %v286_v35 = vshrl.u32 %v2015_v24, 16  ;;  %v290_v36 = vrot.slane %v288_v31, 1  ;;  %v1868_v43 = vld [vmem:[%s2277_s1 + $0x10] sm:$0xff]  }
  0x15   :  { %v2039_v37 = vld [vmem:[%s2276_s0 + $0x30] sm:$0x3f]   ;;  %v908_v44 = vrot.slane %v1978_v6, 1  ;;  %v998_v45 = vrot.slane %v1968_v3, 1  ;;  %v857_v46 = vrot.slane %v1960_v2, 1  ;;  %v1088_v47 = vrot.slane %v1985_v9, 1 }
  0x16   :  { %v291_v38 = vor.u32 %v290_v36, %v286_v35  ;;  %v400_v39 = vshll.u32 %v2039_v37, 16  ;;  %v398_v40 = vshrl.u32 %v2039_v37, 16  ;;  %v953_v48 = vrot.slane %v1992_v15, 1  ;;  %v1869_v52 = vld [vmem:[%s2280_s4 + $0x38] sm:$0xff]   ;;  %v1870_v53 = vld [vmem:[%s2280_s4 + $0x30] sm:$0xff]   ;;  %v1871_v54 = vld [vmem:[%s2280_s4 + $0x28] sm:$0xff]  }
  0x17   :  { %v1178_v49 = vrot.slane %v1997_v17, 1  ;;  %v1043_v50 = vrot.slane %v2015_v24, 1  ;;  %v1133_v51 = vrot.slane %v2039_v37, 1  ;;  %v1872_v55 = vld [vmem:[%s2280_s4 + $0x20] sm:$0xff]   ;;  %v1873_v56 = vld [vmem:[%s2280_s4 + $0x18] sm:$0xff]   ;;  %v1874_v57 = vld [vmem:[%s2281_s5 + $0x8] sm:$0xff]  }
  0x18   :  { %1698 = vmatmul.mubr.msk.bf16.vlgmr.msra.gmra.mxu0 %vm67_vm1, %v179_v32  ;;  %1728 = vmatmul.mubr.msk.bf16.vlgmr.msra.gmra.mxu1 %vm67_vm1, %v459_v33  ;;  %v402_v41 = vrot.slane %v400_v39, 1  ;;  %v1875_v58 = vld [vmem:[%s2280_s4 + $0x10] sm:$0xff]   ;;  %v1876_v59 = vld [vmem:[%s2281_s5] sm:$0xff]   ;;  %v1877_v60 = vld [vmem:[%s2280_s4 + $0x8] sm:$0xff]   ;;  %vm1368_vm2 = vcmask 261120   ;;  %vm1239_vm3 = vcmask 1041408  }
  0x19   :  { %1708 = vmatpush3.bf16.msra.mxu0 %v1951_v0  ;;  %1738 = vmatpush3.bf16.msra.mxu1 %v1865_v34  ;;  %v1351_v61 = vld [vmem:[%s2279_s3] sm:$0xf]  ;;  %vm1429_vm4 = vcmask 1041409   ;;  %vm1432_vm5 = vcmask 1042434   ;;  %vm1435_vm6 = vcmask 1043459   ;;  %vm1438_vm7 = vcmask 1044484  }
  0x1a   :  { %1709 = vmatprep.mubr.msk.bf16.mxu0 %vm1906_vm0, %v1905_v1  ;;  %1719 = vmatprep.subr.bf16.mxu0 %v1905_v1  ;;  %v403_v42 = vor.u32 %v402_v41, %v398_v40  ;;  %v1878_v62 = vld [vmem:[%s2280_s4] sm:$0xff]   ;;  %vm1441_vm8 = vcmask 1045509   ;;  %vm1444_vm9 = vcmask 1046534   ;;  %vm1447_vm10 = vcmask 1047559   ;;  %s1907_s20 = smov [#allocation2]  }
  0x1b   :  { %1739 = vmatprep.mubr.msk.bf16.mxu1 %vm1906_vm0, %v1905_v1  ;;  %1749 = vmatprep.subr.bf16.mxu1 %v1905_v1  ;;  %s1563_s0 = sshll.u32 %s1907_s20, 4  ;;  %s1564_s0 = int_to_ptr.vmem [resolvable:$true] %s1563_s0 }
  0x1c   :  { %p1888_p1 = scmp.lt.s32.totalorder %s1564_s0, %s1564_s0 }
  0x20   :  { %1710 = vmatmul.mubr.msk.bf16.vlgmr.msra.gmra.mxu0 %vm67_vm1, %v291_v38  ;;  %1740 = vmatmul.mubr.msk.bf16.vlgmr.msra.gmra.mxu1 %vm67_vm1, %v1978_v6 }
  0x21   :  { %1720 = vmatpush3.bf16.msra.mxu0 %v1951_v0  ;;  %1750 = vmatpush3.bf16.msra.mxu1 %v1865_v34 }
  0x22   :  { %1721 = vmatprep.mubr.msk.bf16.mxu0 %vm1906_vm0, %v1905_v1  ;;  %1731 = vmatprep.subr.bf16.mxu0 %v1905_v1 }
  0x23   :  { %1751 = vmatprep.mubr.msk.bf16.mxu1 %vm1906_vm0, %v1905_v1  ;;  %1761 = vmatprep.subr.bf16.mxu1 %v1905_v1 }
  0x28   :  { %1722 = vmatmul.mubr.msk.bf16.vlgmr.msra.gmra.mxu0 %vm67_vm1, %v403_v42  ;;  %1752 = vmatmul.mubr.msk.bf16.vlgmr.msra.gmra.mxu1 %vm67_vm1, %v1968_v3 }
  0x29   :  { %1732 = vmatpush3.bf16.msra.mxu0 %v1865_v34  ;;  %1762 = vmatpush3.bf16.msra.mxu1 %v1865_v34 }
  0x2a   :  { %1733 = vmatprep.mubr.msk.bf16.mxu0 %vm1906_vm0, %v1905_v1  ;;  %1743 = vmatprep.subr.bf16.mxu0 %v1905_v1 }
  0x2b   :  { %1763 = vmatprep.mubr.msk.bf16.mxu1 %vm1906_vm0, %v1905_v1  ;;  %1773 = vmatprep.subr.bf16.mxu1 %v1905_v1 }
  0x30   :  { %1734 = vmatmul.mubr.msk.bf16.vlgmr.msra.gmra.mxu0 %vm67_vm1, %v1960_v2  ;;  %1764 = vmatmul.mubr.msk.bf16.vlgmr.msra.gmra.mxu1 %vm67_vm1, %v1985_v9 }
  0x31   :  { %1744 = vmatpush3.bf16.msra.mxu0 %v1865_v34  ;;  %1774 = vmatpush3.bf16.msra.mxu1 %v1865_v34 }
  0x32   :  { %1745 = vmatprep.mubr.msk.bf16.mxu0 %vm1906_vm0, %v1905_v1  ;;  %1755 = vmatprep.subr.bf16.mxu0 %v1905_v1 }
  0x33   :  { %1775 = vmatprep.mubr.msk.bf16.mxu1 %vm1906_vm0, %v1905_v1  ;;  %1785 = vmatprep.subr.bf16.mxu1 %v1905_v1 }
  0x38   :  { %1746 = vmatmul.mubr.msk.bf16.vlgmr.msra.gmra.mxu0 %vm67_vm1, %v1992_v15  ;;  %1776 = vmatmul.mubr.msk.bf16.vlgmr.msra.gmra.mxu1 %vm67_vm1, %v1997_v17 }
  0x39   :  { %1756 = vmatpush3.bf16.msra.mxu0 %v1865_v34  ;;  %1786 = vmatpush3.bf16.msra.mxu1 %v1868_v43 }
  0x3a   :  { %1757 = vmatprep.mubr.msk.bf16.mxu0 %vm1906_vm0, %v1905_v1  ;;  %1767 = vmatprep.subr.bf16.mxu0 %v1905_v1 }
  0x3b   :  { %1787 = vmatprep.mubr.msk.bf16.mxu1 %vm1906_vm0, %v1905_v1  ;;  %1797 = vmatprep.subr.bf16.mxu1 %v1905_v1 }
  0x40   :  { %1758 = vmatmul.mubr.msk.bf16.vlgmr.msra.gmra.mxu0 %vm67_vm1, %v2015_v24  ;;  %1788 = vmatmul.mubr.msk.bf16.vlgmr.msra.gmra.mxu1 %vm67_vm1, %v908_v44 }
  0x41   :  { %1768 = vmatpush3.bf16.msra.mxu0 %v1865_v34  ;;  %1798 = vmatpush3.bf16.msra.mxu1 %v1868_v43 }
  0x42   :  { %1769 = vmatprep.mubr.msk.bf16.mxu0 %vm1906_vm0, %v1905_v1  ;;  %1779 = vmatprep.subr.bf16.mxu0 %v1905_v1 }
  0x43   :  { %1799 = vmatprep.mubr.msk.bf16.mxu1 %vm1906_vm0, %v1905_v1  ;;  %1809 = vmatprep.subr.bf16.mxu1 %v1905_v1 }
  0x48   :  { %1770 = vmatmul.mubr.msk.bf16.vlgmr.msra.gmra.mxu0 %vm67_vm1, %v2039_v37  ;;  %1800 = vmatmul.mubr.msk.bf16.vlgmr.msra.gmra.mxu1 %vm67_vm1, %v998_v45 }
  0x49   :  { %1780 = vmatpush3.bf16.msra.mxu0 %v1868_v43  ;;  %1810 = vmatpush3.bf16.msra.mxu1 %v1868_v43 }
  0x4a   :  { %1781 = vmatprep.mubr.msk.bf16.mxu0 %vm1906_vm0, %v1905_v1  ;;  %1791 = vmatprep.subr.bf16.mxu0 %v1905_v1 }
  0x4b   :  { %1811 = vmatprep.mubr.msk.bf16.mxu1 %vm1906_vm0, %v1905_v1  ;;  %1821 = vmatprep.subr.bf16.mxu1 %v1905_v1 }
  0x50   :  { %1782 = vmatmul.mubr.msk.bf16.vlgmr.msra.gmra.mxu0 %vm67_vm1, %v857_v46  ;;  %1812 = vmatmul.mubr.msk.bf16.vlgmr.msra.gmra.mxu1 %vm67_vm1, %v1088_v47 }
  0x51   :  { %1792 = vmatpush3.bf16.msra.mxu0 %v1868_v43  ;;  %1822 = vmatpush3.bf16.msra.mxu1 %v1868_v43 }
  0x52   :  { %1793 = vmatprep.mubr.msk.bf16.mxu0 %vm1906_vm0, %v1905_v1  ;;  %1803 = vmatprep.subr.bf16.mxu0 %v1905_v1 }
  0x53   :  { %1823 = vmatprep.mubr.msk.bf16.mxu1 %vm1906_vm0, %v1905_v1  ;;  %1835 = vmatprep.subr.bf16.mxu1 %v1905_v1 }
  0x58   :  { %1794 = vmatmul.mubr.msk.bf16.vlgmr.msra.gmra.mxu0 %vm67_vm1, %v953_v48  ;;  %1824 = vmatmul.mubr.msk.bf16.vlgmr.msra.gmra.mxu1 %vm67_vm1, %v1178_v49 }
  0x59   :  { %1804 = vmatpush3.bf16.msra.mxu0 %v1868_v43  ;;  %1805 = vmatprep.mubr.msk.bf16.mxu0 %vm1906_vm0, %v1905_v1 }
  0x5a   :  { %1815 = vmatprep.subr.bf16.mxu0 %v1905_v1  ;;  %1851 = vmatprep.mubr.msk.bf16.mxu1 %vm1906_vm0, %v1905_v1 }
  0x5b   :  { %1836 = vmatpush3.bf16.msra.mxu1 %v1869_v52 }
  0x5c   :  { %1837 = vmatprep.subr.bf16.mxu1 %v1905_v1 }
  0x5f   :  { %1838 = vmatpush3.bf16.msra.mxu1 %v1870_v53 }
  0x60   :  { %1806 = vmatmul.mubr.msk.bf16.vlgmr.msra.gmra.mxu0 %vm67_vm1, %v1043_v50  ;;  %1839 = vmatprep.subr.bf16.mxu1 %v1905_v1 }
  0x61   :  { %1816 = vmatpush3.bf16.msra.mxu0 %v1868_v43  ;;  %1817 = vmatprep.mubr.msk.bf16.mxu0 %vm1906_vm0, %v1905_v1 }
  0x62   :  { %1827 = vmatprep.subr.bf16.mxu0 %v1905_v1 }
  0x63   :  { %1840 = vmatpush3.bf16.msra.mxu1 %v1871_v54 }
  0x64   :  { %1841 = vmatprep.subr.bf16.mxu1 %v1905_v1 }
  0x67   :  { %1842 = vmatpush3.bf16.msra.mxu1 %v1872_v55 }
  0x68   :  { %1818 = vmatmul.mubr.msk.bf16.vlgmr.msra.gmra.mxu0 %vm67_vm1, %v1133_v51  ;;  %1843 = vmatprep.subr.bf16.mxu1 %v1905_v1 }
  0x69   :  { %1831 = vmatprep.mubr.msk.bf16.mxu0 %vm1906_vm0, %v1905_v1  ;;  %1828 = vmatpush3.bf16.msra.mxu0 %v1874_v57 }
  0x6a   :  { %1829 = vmatprep.subr.bf16.mxu0 %v1905_v1 }
  0x6b   :  { %1844 = vmatpush3.bf16.msra.mxu1 %v1873_v56 }
  0x6c   :  { %1845 = vmatprep.subr.bf16.mxu1 %v1905_v1 }
  0x6d   :  { %1830 = vmatpush3.bf16.msra.mxu0 %v1876_v59 }
  0x6f   :  { %1846 = vmatpush3.bf16.msra.mxu1 %v1875_v58 }
  0x70   :  { %1847 = vmatprep.subr.bf16.mxu1 %v1905_v1  ;;  %1832 = vmatmul.mubr.msk.bf16.vlgmr.msra.gmra.mxu0 %vm1368_vm2, %v1351_v61 }
  0x73   :  { %1848 = vmatpush3.bf16.msra.mxu1 %v1877_v60 }
  0x74   :  { %1849 = vmatprep.subr.bf16.mxu1 %v1905_v1 }
  0x77   :  { %1850 = vmatpush3.bf16.msra.mxu1 %v1878_v62 }
  0xc8   :  { %v2182_v63 = vpop.f32.mrf.mxu0  ;;  %v2184_v0 = vpop.f32.mrf.mxu1 }
  0xca   :  { %v1687_v2 = vpop.f32.mrf.mxu0  ;;  %v1705_v3 = vpop.f32.mrf.mxu1 }
  0xcc   :  { %v2186_v4 = vpop.f32.mrf.mxu0  ;;  %v2188_v5 = vpop.f32.mrf.mxu1 }
  0xce   :  { %v1688_v6 = vpop.f32.mrf.mxu0  ;;  %v1706_v7 = vpop.f32.mrf.mxu1 }
  0xd0   :  { %v161_v8 = vpop.f32.mrf.mxu0  ;;  %v2190_v9 = vpop.f32.mrf.mxu1 }
  0xd2   :  { %v1693_v10 = vpop.f32.mrf.mxu0  ;;  %v1717_v11 = vpop.f32.mrf.mxu1 }
  0xd4   :  { %v164_v12 = vpop.f32.mrf.mxu0  ;;  %v2192_v1 = vpop.f32.mrf.mxu1 }
  0xd6   :  { %v1694_v13 = vpop.f32.mrf.mxu0  ;;  %v1718_v14 = vpop.f32.mrf.mxu1 }
  0xd8   :  { %v2194_v15 = vpop.f32.mrf.mxu0  ;;  %v2196_v16 = vpop.f32.mrf.mxu1 }
  0xda   :  { %v1699_v17 = vpop.f32.mrf.mxu0  ;;  %v1729_v18 = vpop.f32.mrf.mxu1 }
  0xdc   :  { %v2198_v19 = vpop.f32.mrf.mxu0  ;;  %v2200_v20 = vpop.f32.mrf.mxu1 }
  0xde   :  { %v1700_v21 = vpop.f32.mrf.mxu0  ;;  %v1730_v22 = vpop.f32.mrf.mxu1 }
  0xe0   :  { %v2202_v23 = vpop.f32.mrf.mxu0  ;;  %v589_v24 = vpop.f32.mrf.mxu1 }
  0xe1   :  { %v590_v25 = vadd.f32 %v589_v24, %v161_v8 }
  0xe2   :  { %v1711_v26 = vpop.f32.mrf.mxu0  ;;  %v1741_v27 = vpop.f32.mrf.mxu1 }
  0xe4   :  { %v2204_v28 = vpop.f32.mrf.mxu0  ;;  %v592_v29 = vpop.f32.mrf.mxu1 }
  0xe5   :  { %v593_v30 = vadd.f32 %v592_v29, %v164_v12 }
  0xe6   :  { %v1712_v31 = vpop.f32.mrf.mxu0  ;;  %v1742_v32 = vpop.f32.mrf.mxu1 }
  0xe8   :  { %v2206_v33 = vpop.f32.mrf.mxu0  ;;  %v675_v34 = vpop.f32.mrf.mxu1 }
  0xe9   :  { %v676_v22 = vadd.f32 %v675_v34, %v2184_v0 }
  0xea   :  { %v1723_v35 = vpop.f32.mrf.mxu0  ;;  %v1753_v36 = vpop.f32.mrf.mxu1 }
  0xec   :  { %v2208_v37 = vpop.f32.mrf.mxu0  ;;  %v678_v38 = vpop.f32.mrf.mxu1 }
  0xed   :  { %v679_v18 = vadd.f32 %v678_v38, %v2188_v5 }
  0xee   :  { %v1724_v39 = vpop.f32.mrf.mxu0  ;;  %v1754_v40 = vpop.f32.mrf.mxu1 }
  0xf0   :  { %v546_v41 = vpop.f32.mrf.mxu0  ;;  %v761_v42 = vpop.f32.mrf.mxu1 }
  0xf1   :  { %v547_v0 = vadd.f32 %v546_v41, %v2182_v63 }
  0xf2   :  { %v1735_v43 = vpop.f32.mrf.mxu0  ;;  %v1765_v44 = vpop.f32.mrf.mxu1 }
  0xf4   :  { %v549_v45 = vpop.f32.mrf.mxu0  ;;  %v764_v46 = vpop.f32.mrf.mxu1 }
  0xf5   :  { %v550_v5 = vadd.f32 %v549_v45, %v2186_v4  ;;  %v765_v34 = vadd.f32 %v764_v46, %v2192_v1 }
  0xf6   :  { %v1736_v47 = vpop.f32.mrf.mxu0  ;;  %v1766_v48 = vpop.f32.mrf.mxu1 }
  0xf8   :  { %v2210_v49 = vpop.f32.mrf.mxu0  ;;  %v2212_v50 = vpop.f32.mrf.mxu1 }
  0xfa   :  { %v1747_v51 = vpop.f32.mrf.mxu0  ;;  %v1777_v52 = vpop.f32.mrf.mxu1 }
  0xfb   :  { %v762_v51 = vadd.f32 %v761_v42, %v2190_v9  ;;  %v2239_v9 = vld [vmem:[%s2278_s2] ss:$0 sm:$0xff] }
  0xfc   :  { %v2214_v53 = vpop.f32.mrf.mxu0  ;;  %v2216_v54 = vpop.f32.mrf.mxu1 }
  0xfe   :  { %v1748_v55 = vpop.f32.mrf.mxu0  ;;  %v1778_v56 = vpop.f32.mrf.mxu1 }
 0x100   :  { %v2218_v57 = vpop.f32.mrf.mxu0  ;;  %v946_v58 = vpop.f32.mrf.mxu1 }
 0x101   :  { %v1225_v6 = vadd.f32 %v946_v58, %v590_v25 }
 0x102   :  { %v1759_v59 = vpop.f32.mrf.mxu0  ;;  %v1789_v60 = vpop.f32.mrf.mxu1 }
 0x104   :  { %v2220_v61 = vpop.f32.mrf.mxu0  ;;  %v949_v62 = vpop.f32.mrf.mxu1 }
 0x105   :  { %v1226_v2 = vadd.f32 %v949_v62, %v593_v30 }
 0x106   :  { %v1760_v3 = vpop.f32.mrf.mxu0  ;;  %v1790_v7 = vpop.f32.mrf.mxu1 }
 0x107   :  { %v1248_v8 = vsel %vm1239_vm3, %v1226_v2, -inf }
 0x108   :  { %v2223_v10 = vpop.f32.mrf.mxu0  ;;  %v1249_v11 = vmax.f32 %v1225_v6, %v1248_v8  ;;  %v1036_v12 = vpop.f32.mrf.mxu1  ;;  %v636_v8 = vadd.f32 %v2214_v53, %v2198_v19 }
 0x109   :  { %v1229_v30 = vadd.f32 %v1036_v12, %v676_v22 }
 0x10a   :  { %v1771_v13 = vpop.f32.mrf.mxu0  ;;  %v1250_v14 = vrot.slane %v1249_v11, 4  ;;  %v1801_v17 = vpop.f32.mrf.mxu1 }
 0x10b   :  { %v851_v17 = vadd.f32 %v2216_v54, %v2200_v20 }
 0x10c   :  { %v2226_v21 = vpop.f32.mrf.mxu0  ;;  %v1251_v24 = vmax.f32 %v1249_v11, %v1250_v14  ;;  %v1039_v26 = vpop.f32.mrf.mxu1  ;;  %v633_v14 = vadd.f32 %v2210_v49, %v2194_v15 }
 0x10d   :  { %v1230_v27 = vadd.f32 %v1039_v26, %v679_v18  ;;  %v848_v26 = vadd.f32 %v2212_v50, %v2196_v16 }
 0x10e   :  { %v1772_v25 = vpop.f32.mrf.mxu0  ;;  %v1252_v29 = vrot.slane %v1251_v24, 2  ;;  %v1802_v31 = vpop.f32.mrf.mxu1 }
 0x10f   :  { %v1264_v32 = vsel %vm1239_vm3, %v1230_v27, -inf }
 0x110   :  { %v901_v35 = vpop.f32.mrf.mxu0  ;;  %v1253_v36 = vmax.f32 %v1251_v24, %v1252_v29  ;;  %v1265_v39 = vmax.f32 %v1229_v30, %v1264_v32  ;;  %v1126_v40 = vpop.f32.mrf.mxu1 }
 0x111   :  { %v1223_v58 = vadd.f32 %v901_v35, %v547_v0  ;;  %v1233_v2 = vadd.f32 %v1126_v40, %v762_v51 }
 0x112   :  { %v1783_v43 = vpop.f32.mrf.mxu0  ;;  %v1266_v38 = vrot.slane %v1265_v39, 4  ;;  %v1813_v44 = vpop.f32.mrf.mxu1  ;;  %v1254_v47 = vrot.slane %v1253_v36, 1 }
 0x113   :  { %v722_v44 = vadd.f32 %v2220_v61, %v2204_v28 }
 0x114   :  { %v904_v48 = vpop.f32.mrf.mxu0  ;;  %v1267_v52 = vmax.f32 %v1265_v39, %v1266_v38  ;;  %v1129_v56 = vpop.f32.mrf.mxu1  ;;  %v1255_v3 = vmax.f32 %v1253_v36, %v1254_v47 }
 0x115   :  { %v1224_v55 = vadd.f32 %v904_v48, %v550_v5  ;;  %v1234_v59 = vadd.f32 %v1129_v56, %v765_v34  ;;  %v719_v48 = vadd.f32 %v2218_v57, %v2202_v23 }
 0x116   :  { %v1784_v60 = vpop.f32.mrf.mxu0  ;;  %v1268_v62 = vrot.slane %v1267_v52, 2  ;;  %v1814_v45 = vpop.f32.mrf.mxu1  ;;  %v1312_v18 = vadd.f32 %v2239_v9, %v1255_v3 }
 0x117   :  { %v1240_v4 = vsel %vm1239_vm3, %v1224_v55, -inf  ;;  %v1280_v63 = vsel %vm1239_vm3, %v1234_v59, -inf }
 0x118   :  { %v1241_v6 = vmax.f32 %v1223_v58, %v1240_v4  ;;  %v991_v1 = vpop.f32.mrf.mxu0  ;;  %v1281_v41 = vmax.f32 %v1233_v2, %v1280_v63  ;;  %v1216_v42 = vpop.f32.mrf.mxu1  ;;  %v1269_v11 = vmax.f32 %v1267_v52, %v1268_v62  ;;  %v1320_v54 = vmax.f32 %v1312_v18, 0.0 }
 0x119   :  { %v1227_v53 = vadd.f32 %v991_v1, %v633_v14  ;;  %v1237_v15 = vadd.f32 %v1216_v42, %v848_v26 }
 0x11a   :  { %v1242_v46 = vrot.slane %v1241_v6, 4  ;;  %v1795_v7 = vpop.f32.mrf.mxu0  ;;  %v1282_v12 = vrot.slane %v1281_v41, 4  ;;  %v1825_v13 = vpop.f32.mrf.mxu1  ;;  %v1270_v32 = vrot.slane %v1269_v11, 1  ;;  %v1328_v51 = vpack.c.bf16 %v1320_v54, %v1320_v54 }
 0x11c   :  { %v1243_v22 = vmax.f32 %v1241_v6, %v1242_v46  ;;  %v994_v24 = vpop.f32.mrf.mxu0  ;;  %v1283_v27 = vmax.f32 %v1281_v41, %v1282_v12  ;;  %v1219_v29 = vpop.f32.mrf.mxu1  ;;  %v1271_v0 = vmax.f32 %v1269_v11, %v1270_v32  ;;  %v1421_v6 = vunpack.c.l.b16 %v1328_v51 }
 0x11d   :  { %v1228_v25 = vadd.f32 %v994_v24, %v636_v8  ;;  %v1238_v30 = vadd.f32 %v1219_v29, %v851_v17  ;;  %v805_v41 = vadd.f32 %v2223_v10, %v2206_v33  ;;  %v808_v11 = vadd.f32 %v2226_v21, %v2208_v37 }
 0x11e   :  { %v1244_v19 = vrot.slane %v1243_v22, 2  ;;  %v1796_v31 = vpop.f32.mrf.mxu0  ;;  %v1284_v35 = vrot.slane %v1283_v27, 2  ;;  %v1826_v20 = vpop.f32.mrf.mxu1  ;;  %v1314_v45 = vadd.f32 %v2239_v9, %v1271_v0  ;;  %v1428_v17 = vrot.slane %v1421_v6, 7 }
 0x11f   :  { %v1256_v49 = vsel %vm1239_vm3, %v1228_v25, -inf  ;;  %v1296_v40 = vsel %vm1239_vm3, %v1238_v30, -inf }
 0x120   :  { %v1245_v36 = vmax.f32 %v1243_v22, %v1244_v19  ;;  %v1257_v39 = vmax.f32 %v1227_v53, %v1256_v49  ;;  %v1081_v43 = vpop.f32.mrf.mxu0  ;;  %v1297_v16 = vmax.f32 %v1237_v15, %v1296_v40  ;;  %v1285_v34 = vmax.f32 %v1283_v27, %v1284_v35 }
 0x121   :  { %v1231_v2 = vadd.f32 %v1081_v43, %v719_v48  ;;  %v1322_v12 = vmax.f32 %v1314_v45, 0.0 }
 0x122   :  { %v1246_v50 = vrot.slane %v1245_v36, 1  ;;  %v1258_v5 = vrot.slane %v1257_v39, 4  ;;  %v1807_v38 = vpop.f32.mrf.mxu0  ;;  %v1298_v47 = vrot.slane %v1297_v16, 4  ;;  %v1286_v28 = vrot.slane %v1285_v34, 1 }
 0x123   :  { %v1330_v53 = vpack.c.bf16 %v1322_v12, %v1322_v12 }
 0x124   :  { %v1247_v52 = vmax.f32 %v1245_v36, %v1246_v50  ;;  %v1259_v55 = vmax.f32 %v1257_v39, %v1258_v5  ;;  %v1084_v56 = vpop.f32.mrf.mxu0  ;;  %v1299_v58 = vmax.f32 %v1297_v16, %v1298_v47  ;;  %v1287_v13 = vmax.f32 %v1285_v34, %v1286_v28 }
 0x125   :  { %v1232_v59 = vadd.f32 %v1084_v56, %v722_v44  ;;  %v1423_v54 = vunpack.c.l.b16 %v1330_v53 }
 0x126   :  { %v1311_v60 = vadd.f32 %v2239_v9, %v1247_v52  ;;  %v1260_v62 = vrot.slane %v1259_v55, 2  ;;  %v1808_v4 = vpop.f32.mrf.mxu0  ;;  %v1300_v61 = vrot.slane %v1299_v58, 2  ;;  %v1316_v30 = vadd.f32 %v2239_v9, %v1287_v13 }
 0x127   :  { %v1272_v3 = vsel %vm1239_vm3, %v1232_v59, -inf  ;;  %v1434_v44 = vrot.slane %v1423_v54, 5 }
 0x128   :  { %v1319_v63 = vmax.f32 %v1311_v60, 0.0  ;;  %v1261_v23 = vmax.f32 %v1259_v55, %v1260_v62  ;;  %v1273_v57 = vmax.f32 %v1231_v2, %v1272_v3  ;;  %v1171_v1 = vpop.f32.mrf.mxu0  ;;  %v1301_v14 = vmax.f32 %v1299_v58, %v1300_v61 }
 0x129   :  { %v1235_v29 = vadd.f32 %v1171_v1, %v805_v41  ;;  %v1324_v36 = vmax.f32 %v1316_v30, 0.0 }
 0x12a   :  { %v1327_v42 = vpack.c.bf16 %v1319_v63, %v1319_v63  ;;  %v1262_v46 = vrot.slane %v1261_v23, 1  ;;  %v1274_v7 = vrot.slane %v1273_v57, 4  ;;  %v1819_v8 = vpop.f32.mrf.mxu0  ;;  %v1302_v37 = vrot.slane %v1301_v14, 1 }
 0x12b   :  { %v1332_v0 = vpack.c.bf16 %v1324_v36, %v1324_v36 }
 0x12c   :  { %v1420_v18 = vunpack.c.l.b16 %v1327_v42  ;;  %v1263_v22 = vmax.f32 %v1261_v23, %v1262_v46  ;;  %v1275_v24 = vmax.f32 %v1273_v57, %v1274_v7  ;;  %v1174_v26 = vpop.f32.mrf.mxu0  ;;  %v1303_v39 = vmax.f32 %v1301_v14, %v1302_v37  ;;  %v1622_v14 = vld [vmem:[%s2282_s6] ss:$0 sm:$0xff]  ;;  %s1883_s6 = scalar_lea.vmem %s1564_s0, 128 }
 0x12d   :  { %v1236_v27 = vadd.f32 %v1174_v26, %v808_v11  ;;  %v1425_v58 = vunpack.c.l.b16 %v1332_v0  ;;  %p1884_p0 = scmp.ne.s32.totalorder %s1564_s0, %s1883_s6  ;;  %p1889_p2 = scmp.lt.s32.totalorder %s1883_s6, %s1883_s6 }
 0x12e   :  { %v1430_v25 = vsel %vm1429_vm4, %v1428_v17, %v1420_v18  ;;  %v1313_v33 = vadd.f32 %v2239_v9, %v1263_v22  ;;  %v1276_v10 = vrot.slane %v1275_v24, 2  ;;  %v1820_v19 = vpop.f32.mrf.mxu0  ;;  %v1318_v34 = vadd.f32 %v2239_v9, %v1303_v39 }
 0x12f   :  { %v1288_v21 = vsel %vm1239_vm3, %v1236_v27, -inf  ;;  %v1440_v45 = vrot.slane %v1425_v58, 3  ;;  %p1890_p3 = por %p1889_p2, %p1888_p1 }
 0x130   :  { %v1321_v31 = vmax.f32 %v1313_v33, 0.0  ;;  %v1277_v32 = vmax.f32 %v1275_v24, %v1276_v10  ;;  %v1289_v35 = vmax.f32 %v1235_v29, %v1288_v21  ;;  %v1326_v59 = vmax.f32 %v1318_v34, 0.0  ;;  %v1406_v8 = vpop.f32.mrf.mxu0 }
 0x131   :  { %p1891_p4 = pnand %p1890_p3, %p1884_p0 }
 0x132   :  { %v1329_v15 = vpack.c.bf16 %v1321_v31, %v1321_v31  ;;  %v1278_v49 = vrot.slane %v1277_v32, 1  ;;  %v1290_v20 = vrot.slane %v1289_v35, 4  ;;  %v1334_v28 = vpack.c.bf16 %v1326_v59, %v1326_v59  ;;  %v1833_v11 = vpop.f32.mrf.mxu0 }
 0x134   :  { %v1422_v40 = vunpack.c.l.b16 %v1329_v15  ;;  %v1279_v43 = vmax.f32 %v1277_v32, %v1278_v49  ;;  %v1291_v16 = vmax.f32 %v1289_v35, %v1290_v20  ;;  %v1427_v23 = vunpack.c.l.b16 %v1334_v28 }
 0x136   :  { %v1431_v50 = vrot.slane %v1422_v40, 6  ;;  %v1315_v5 = vadd.f32 %v2239_v9, %v1279_v43  ;;  %v1292_v38 = vrot.slane %v1291_v16, 2  ;;  %v1446_v41 = vrot.slane %v1427_v23, 1 }
 0x138   :  { %v1433_v47 = vsel %vm1432_vm5, %v1431_v50, %v1430_v25  ;;  %v1323_v48 = vmax.f32 %v1315_v5, 0.0  ;;  %v1293_v51 = vmax.f32 %v1291_v16, %v1292_v38 }
 0x139   :  { %v1436_v52 = vsel %vm1435_vm6, %v1434_v44, %v1433_v47 }
 0x13a   :  { %v1331_v55 = vpack.c.bf16 %v1323_v48, %v1323_v48  ;;  %v1294_v56 = vrot.slane %v1293_v51, 1 }
 0x13c   :  { %v1424_v60 = vunpack.c.l.b16 %v1331_v55  ;;  %v1295_v62 = vmax.f32 %v1293_v51, %v1294_v56 }
 0x13e   :  { %v1437_v2 = vrot.slane %v1424_v60, 4  ;;  %v1317_v4 = vadd.f32 %v2239_v9, %v1295_v62  ;;  %v1409_v9 = vpop.f32.mrf.mxu0 }
 0x140   :  { %v1325_v61 = vmax.f32 %v1317_v4, 0.0  ;;  %v1439_v3 = vsel %vm1438_vm7, %v1437_v2, %v1436_v52  ;;  %v1834_v12 = vpop.f32.mrf.mxu0 }
 0x141   :  { %v1442_v6 = vsel %vm1441_vm8, %v1440_v45, %v1439_v3 }
 0x142   :  { %v1333_v63 = vpack.c.bf16 %v1325_v61, %v1325_v61 }
 0x144   :  { %v1426_v57 = vunpack.c.l.b16 %v1333_v63 }
 0x146   :  { %v1443_v1 = vrot.slane %v1426_v57, 2 }
 0x148   :  { %v1445_v42 = vsel %vm1444_vm9, %v1443_v1, %v1442_v6 }
 0x149   :  { %v1448_v46 = vsel %vm1447_vm10, %v1446_v41, %v1445_v42 }
 0x14a   :  { %v1449_v7 = vpack.c.b16 %v1448_v46, %v1448_v46 }
 0x14c   :  { %1852 = vmatmul.mubr.bf16.vlgmr.msra.gmra.mxu1 %v1449_v7 }
 0x20c   :  { %v1533_v13 = vpop.f32.mrf.mxu1 }
 0x20d   :  { %v1534_v17 = vadd.f32 %v1533_v13, %v1406_v8 }
 0x20e   :  { %v1853_v18 = vpop.f32.mrf.mxu1 }
 0x20f   :  { %v1546_v22 = vadd.f32 %v1622_v14, %v1534_v17 }
 0x210   :  { %v1536_v24 = vpop.f32.mrf.mxu1 }
 0x211   :  { %1547 = vmax.xlane.f32.xlu0 %v1546_v22 }
 0x212   :  { %v1854_v26 = vpop.f32.mrf.mxu1 }
 0x29a   :  { %v1548_v27 = vpop.xlane.xlu0 %1547 }
 0x29b   :  { %v1549_v25 = vsub.f32 %v1546_v22, %v1548_v27 }
 0x29d   :  { %v1550_v33 = vmul.f32 1.442695, %v1549_v25 }
 0x29f   :  { %1879 = vpow2.f32 %v1550_v33 }
 0x2ac   :  { %v1880_v10 = vpop.eup %1879 }
 0x2ad   :  { %1552 = vadd.xlane.f32.xlu0 %v1880_v10 }
 0x336   :  { %v1553_v29 = vpop.xlane.xlu0 %1552 }
 0x337   :  { %1881 = vrcp.f32 %v1553_v29 }
 0x344   :  { %v1882_v19 = vpop.eup %1881 }
 0x345   :  { %v1555_v53 = vmul.f32 %v1882_v19, %v1880_v10 }
 0x347   :  { %1556 = vst [vmem:[#allocation2] sm:$0xff] %v1555_v53 }
 0x348   :  { %1894 = shalt.err (!%p1891_p4)
}
 0x349   :  { %1566 = dma.vmem_to_hbm [thread:$0]  %s1564_s0, 128, %s2283_s7, [#allocation3]  }
 0x34a   :  { %1903 = dma.done.wait [#allocation3], 128  }
 0x34b   :  { %1904 = vsyncadd [#allocation3], 4294967168 }
 0x34c   :  { %1570 = vsyncpa [#allocation3], 1 }

</bundles_post_ra>
